<compile_context>
chip_gen: v7x
topology: tpu7x:2x2x1
jax: 0.10.0
libtpu: 0.0.40
codegen_flags: <defaults>
</compile_context>

<pallas_src>
import jax
import jax.numpy as jnp
from jax import lax
from jax.experimental import pallas as pl
from jax.experimental.pallas import tpu as pltpu

_BIG = 1e30            # Python float -> kernel immediate, not a captured const
_PAD_LABEL = -(2 ** 31)  # sentinel label for padded rows/columns


def _round_up(v, m):
    return (v + m - 1) // m * m


def _make_kernel(margin):
    margin = float(margin)

    def kernel(xr_ref, xc_ref, sqr_ref, sqc_ref, lr_ref, lc_ref,
               out_ref, ap_acc, an_acc):
        j = pl.program_id(1)

        @pl.when(j == 0)
        def _init():
            ap_acc[...] = jnp.full(ap_acc.shape, -_BIG, ap_acc.dtype)
            an_acc[...] = jnp.full(an_acc.shape, _BIG, an_acc.dtype)

        # Gram tile on the MXU; contract last axis of both operands (no
        # explicit transpose).  Operands may be bf16; accumulate in f32.
        gram = lax.dot_general(
            xr_ref[...], xc_ref[...],
            dimension_numbers=(((1,), (1,)), ((), ())),
            preferred_element_type=jnp.float32)            # (tm, tn) f32

        # Squared pairwise distances.  Row/col norms are precomputed f32
        # inputs; padded columns carry +BIG in sqc so they can never win the
        # hardest-negative min, and the sentinel label keeps them out of the
        # hardest-positive max for real rows.
        dist2 = sqr_ref[...] + sqc_ref[...] - 2.0 * gram    # (tm, tn)

        same = lr_ref[...] == lc_ref[...]                   # (tm, tn) bool

        pos = jnp.where(same, dist2, -_BIG)                 # hardest positive
        neg = jnp.where(same, _BIG, dist2)                  # hardest negative

        ap_acc[...] = jnp.maximum(ap_acc[...],
                                  jnp.max(pos, axis=1, keepdims=True))
        an_acc[...] = jnp.minimum(an_acc[...],
                                  jnp.min(neg, axis=1, keepdims=True))

        @pl.when(j == pl.num_programs(1) - 1)
        def _finalize():
            # sqrt only on the mined (tm, 1) values; mining on squared
            # distances is equivalent since sqrt(clamp(.)) is monotone.
            d_ap = jnp.sqrt(jnp.maximum(ap_acc[...], 1e-12))
            d_an = jnp.sqrt(jnp.maximum(an_acc[...], 1e-12))
            out_ref[...] = jnp.maximum(d_ap - d_an + margin, 0.0)

    return kernel


def triplet_loss(inputs, targets, margin=0.3, block_m=512, block_n=256,
                 compute_dtype=jnp.bfloat16):
    """inputs: (N, D) float, targets: (N,) int -> scalar f32 loss."""
    n, d = inputs.shape
    d_pad = _round_up(d, 128)

    # ---- tile-size selection -------------------------------------------------
    if _round_up(n, 8) <= block_n:
        # Small batch: a single (n_pad x n_pad) tile -> no all-padding tiles.
        tm = tn = n_pad = _round_up(n, 8)
    else:
        tn = block_n                       # 256-wide: whole MXU passes on v6e/v7x
        tm = block_m                       # resident row tile; col traffic ~ 1/tm
        n_pad = _round_up(n, max(tm, tn))
        if n_pad // tm < 2:                # keep >=2 row blocks for v7x's 2 TCs
            tm = max(tn, n_pad // 2)
    # TODO(synk): for very large D, split D onto a third "arbitrary" grid axis
    # with a (tm, tn) f32 gram accumulator instead of loading all of d_pad.

    # ---- host-side preprocessing (one pass over (N, D)) -----------------------
    x32 = inputs.astype(jnp.float32)
    xq = x32.astype(compute_dtype)                       # bf16 HBM stream by default
    x_pad = jnp.zeros((n_pad, d_pad), compute_dtype).at[:n, :d].set(xq)

    # Norms in f32 from the *quantized* features, so all dist2 terms are
    # mutually consistent and the diagonal stays ~0.
    sq = jnp.sum(jnp.square(xq.astype(jnp.float32)), axis=1)            # (n,)
    sq_row = jnp.zeros((n_pad, 1), jnp.float32).at[:n, 0].set(sq)       # |x_i|^2
    # Column validity folded into the data: padded columns get +BIG norms.
    sq_col = jnp.full((1, n_pad), _BIG, jnp.float32).at[0, :n].set(sq)  # |x_j|^2

    lbl = targets.astype(jnp.int32)
    lbl_row = jnp.full((n_pad, 1), _PAD_LABEL, jnp.int32).at[:n, 0].set(lbl)
    lbl_col = jnp.full((1, n_pad), _PAD_LABEL, jnp.int32).at[0, :n].set(lbl)

    grid = (n_pad // tm, n_pad // tn)

    # VMEM budget hint (double-buffered blocks + scratch + intermediates),
    # re-derived for v7x's 64 MiB physical VMEM.
    item = jnp.dtype(compute_dtype).itemsize
    lane = lambda v: _round_up(v, 128)
    est = 2 * (tm + tn) * d_pad * item           # feature tiles (double-buffered)
    est += 2 * 3 * tm * 128 * 4                  # sq_row, lbl_row, out (lane-padded)
    est += 2 * 2 * 8 * lane(tn) * 4              # sq_col, lbl_col (sublane-padded)
    est += 2 * tm * 128 * 4                      # two (tm, 1) scratch accumulators
    est += 8 * tm * lane(tn) * 4                 # headroom for (tm, tn) intermediates
    vmem_limit = int(min(max(2 * est, 32 * 1024 * 1024), 64 * 1024 * 1024))

    hinge = pl.pallas_call(
        _make_kernel(margin),
        out_shape=jax.ShapeDtypeStruct((n_pad, 1), jnp.float32),
        grid_spec=pltpu.PrefetchScalarGridSpec(
            num_scalar_prefetch=0,
            grid=grid,
            in_specs=[
                pl.BlockSpec((tm, d_pad), lambda i, j: (i, 0)),  # x rows (resident over j)
                pl.BlockSpec((tn, d_pad), lambda i, j: (j, 0)),  # x cols (streamed)
                pl.BlockSpec((tm, 1), lambda i, j: (i, 0)),      # |x_i|^2
                pl.BlockSpec((1, tn), lambda i, j: (0, j)),      # |x_j|^2 (+BIG padding)
                pl.BlockSpec((tm, 1), lambda i, j: (i, 0)),      # labels (rows)
                pl.BlockSpec((1, tn), lambda i, j: (0, j)),      # labels (cols)
            ],
            out_specs=pl.BlockSpec((tm, 1), lambda i, j: (i, 0)),
            scratch_shapes=[
                pltpu.VMEM((tm, 1), jnp.float32),   # running max dist2 (positives)
                pltpu.VMEM((tm, 1), jnp.float32),   # running min dist2 (negatives)
            ],
        ),
        compiler_params=pltpu.CompilerParams(
            dimension_semantics=("parallel", "arbitrary"),
            vmem_limit_bytes=vmem_limit),
    )(x_pad, x_pad, sq_row, sq_col, lbl_row, lbl_col)

    # Mean over the true rows only (padded rows are sliced away).
    return jnp.mean(hinge[:n, 0])


def _triplet_loss_ref(inputs, targets, margin=0.3):
    # Pure-JAX reference mirroring the PyTorch module semantics.
    x = inputs.astype(jnp.float32)
    n = x.shape[0]
    sq = jnp.sum(x * x, axis=1, keepdims=True)
    gram = jnp.matmul(x, x.T, precision=lax.Precision.HIGHEST)
    dist = jnp.sqrt(jnp.maximum(sq + sq.T - 2.0 * gram, 1e-12))
    t = targets.reshape(n, 1)
    mask = t == t.T
    dist_ap = jnp.max(jnp.where(mask, dist, -_BIG), axis=1)
    dist_an = jnp.min(jnp.where(mask, _BIG, dist), axis=1)
    return jnp.mean(jnp.maximum(dist_ap - dist_an + margin, 0.0))


if __name__ == "__main__":
    key = jax.random.PRNGKey(0)
    k1, k2 = jax.random.split(key)

    # --- small batch (single-tile path), shapes implied by the module --------
    n, d = 8, 32
    inputs = jax.random.normal(k1, (n, d), dtype=jnp.float32)
    targets = jnp.array([0, 0, 1, 1, 2, 2, 3, 3], dtype=jnp.int32)  # 4 ids x 2

    ref = _triplet_loss_ref(inputs, targets, margin=0.3)

    loss_f32 = jax.block_until_ready(
        triplet_loss(inputs, targets, margin=0.3, compute_dtype=jnp.float32))
    assert jnp.allclose(loss_f32, ref, atol=1e-3, rtol=1e-3), (loss_f32, ref)

    loss_bf16 = jax.block_until_ready(triplet_loss(inputs, targets, margin=0.3))
    assert jnp.allclose(loss_bf16, ref, atol=1e-1, rtol=5e-2), (loss_bf16, ref)

    # --- larger batch exercising the multi-tile grid path --------------------
    n2, d2 = 288, 64
    inputs2 = jax.random.normal(k2, (n2, d2), dtype=jnp.float32)
    targets2 = jnp.arange(n2, dtype=jnp.int32) % 72                  # 72 ids x 4

    ref2 = _triplet_loss_ref(inputs2, targets2, margin=0.3)

    loss2_f32 = jax.block_until_ready(
        triplet_loss(inputs2, targets2, margin=0.3, compute_dtype=jnp.float32))
    assert jnp.allclose(loss2_f32, ref2, atol=1e-3, rtol=1e-3), (loss2_f32, ref2)

    loss2_bf16 = jax.block_until_ready(triplet_loss(inputs2, targets2, margin=0.3))
    assert jnp.allclose(loss2_bf16, ref2, atol=1e-1, rtol=5e-2), (loss2_bf16, ref2)

    print("KERNEL_OK")
</pallas_src>

<mosaic_0001>
module attributes {stable_mosaic.version = 11 : i64} {
  func.func @kernel(%arg0: i32, %arg1: i32, %arg2: memref<8x128xf32, #tpu.memory_space<vmem>>, %arg3: memref<8x128xf32, #tpu.memory_space<vmem>>, %arg4: memref<8x1xf32, #tpu.memory_space<vmem>>, %arg5: memref<1x8xf32, #tpu.memory_space<vmem>>, %arg6: memref<8x1xi32, #tpu.memory_space<vmem>>, %arg7: memref<1x8xi32, #tpu.memory_space<vmem>>, %arg8: memref<8x1xf32, #tpu.memory_space<vmem>>, %arg9: memref<8x1xf32, #tpu.memory_space<vmem>>, %arg10: memref<8x1xf32, #tpu.memory_space<vmem>>) attributes {dimension_semantics = [#tpu.dimension_semantics<parallel>, #tpu.dimension_semantics<arbitrary>], iteration_bounds = array<i64: 1, 1>, scalar_prefetch = 0 : i64, scratch_operands = 2 : i64, tpu.core_type = #tpu.core_type<tc>, window_params = [{transform_indices = @transform_0, window_bounds = array<i64: 8, 128>}, {transform_indices = @transform_1, window_bounds = array<i64: 8, 128>}, {transform_indices = @transform_2, window_bounds = array<i64: 8, 1>}, {transform_indices = @transform_3, window_bounds = array<i64: 1, 8>}, {transform_indices = @transform_4, window_bounds = array<i64: 8, 1>}, {transform_indices = @transform_5, window_bounds = array<i64: 1, 8>}, {transform_indices = @transform_6, window_bounds = array<i64: 8, 1>}]} {
    %c0_i32 = arith.constant 0 : i32
    %0 = arith.cmpi eq, %arg1, %c0_i32 : i32
    %1 = arith.extui %0 : i1 to i32
    %c0_i32_0 = arith.constant 0 : i32
    %2 = arith.cmpi ne, %1, %c0_i32_0 : i32
    scf.if %2 {
      %cst_27 = arith.constant -1.000000e+30 : f32
      %36 = vector.broadcast %cst_27 : f32 to vector<8x1xf32>
      %c0_28 = arith.constant 0 : index
      %c0_29 = arith.constant 0 : index
      %37 = vector.load %arg9[%c0_28, %c0_29] : memref<8x1xf32, #tpu.memory_space<vmem>>, vector<8x1xf32>
      tpu.vector_store %arg9[%c0_28, %c0_29], %36 {strides = array<i32>} : memref<8x1xf32, #tpu.memory_space<vmem>>, vector<8x1xf32>,
      %cst_30 = arith.constant 1.000000e+30 : f32
      %38 = vector.broadcast %cst_30 : f32 to vector<8x1xf32>
      %c0_31 = arith.constant 0 : index
      %c0_32 = arith.constant 0 : index
      %39 = vector.load %arg10[%c0_31, %c0_32] : memref<8x1xf32, #tpu.memory_space<vmem>>, vector<8x1xf32>
      tpu.vector_store %arg10[%c0_31, %c0_32], %38 {strides = array<i32>} : memref<8x1xf32, #tpu.memory_space<vmem>>, vector<8x1xf32>,
    } else {
    }
    %c0 = arith.constant 0 : index
    %c0_1 = arith.constant 0 : index
    %3 = vector.load %arg2[%c0, %c0_1] : memref<8x128xf32, #tpu.memory_space<vmem>>, vector<8x128xf32>
    %c0_2 = arith.constant 0 : index
    %c0_3 = arith.constant 0 : index
    %4 = vector.load %arg3[%c0_2, %c0_3] : memref<8x128xf32, #tpu.memory_space<vmem>>, vector<8x128xf32>
    %cst = arith.constant dense<0.000000e+00> : vector<8x8xf32>
    %5 = tpu.matmul %3, %4, %cst {dimension_numbers = #tpu.dot_dimension_numbers<[1], [1], [0], [0], [0, 0, 1, 0], [], []>} : vector<8x128xf32>, vector<8x128xf32>, vector<8x8xf32> -> vector<8x8xf32>
    %c0_4 = arith.constant 0 : index
    %c0_5 = arith.constant 0 : index
    %6 = vector.load %arg4[%c0_4, %c0_5] : memref<8x1xf32, #tpu.memory_space<vmem>>, vector<8x1xf32>
    %c0_6 = arith.constant 0 : index
    %c0_7 = arith.constant 0 : index
    %7 = vector.load %arg5[%c0_6, %c0_7] : memref<1x8xf32, #tpu.memory_space<vmem>>, vector<1x8xf32>
    %8 = vector.broadcast %6 : vector<8x1xf32> to vector<8x8xf32>
    %9 = vector.broadcast %7 : vector<1x8xf32> to vector<8x8xf32>
    %10 = arith.addf %8, %9 : vector<8x8xf32>
    %cst_8 = arith.constant 2.000000e+00 : f32
    %11 = vector.broadcast %cst_8 : f32 to vector<8x8xf32>
    %12 = arith.mulf %11, %5 : vector<8x8xf32>
    %13 = arith.subf %10, %12 : vector<8x8xf32>
    %c0_9 = arith.constant 0 : index
    %c0_10 = arith.constant 0 : index
    %14 = vector.load %arg6[%c0_9, %c0_10] : memref<8x1xi32, #tpu.memory_space<vmem>>, vector<8x1xi32>
    %c0_11 = arith.constant 0 : index
    %c0_12 = arith.constant 0 : index
    %15 = vector.load %arg7[%c0_11, %c0_12] : memref<1x8xi32, #tpu.memory_space<vmem>>, vector<1x8xi32>
    %16 = vector.broadcast %14 : vector<8x1xi32> to vector<8x8xi32>
    %17 = vector.broadcast %15 : vector<1x8xi32> to vector<8x8xi32>
    %18 = arith.cmpi eq, %16, %17 : vector<8x8xi32>
    %cst_13 = arith.constant -1.000000e+30 : f32
    %19 = vector.broadcast %cst_13 : f32 to vector<8x8xf32>
    %20 = arith.select %18, %13, %19 : vector<8x8xi1>, vector<8x8xf32>
    %cst_14 = arith.constant 1.000000e+30 : f32
    %21 = vector.broadcast %cst_14 : f32 to vector<8x8xf32>
    %22 = arith.select %18, %21, %13 : vector<8x8xi1>, vector<8x8xf32>
    %c0_15 = arith.constant 0 : index
    %c0_16 = arith.constant 0 : index
    %23 = vector.load %arg9[%c0_15, %c0_16] : memref<8x1xf32, #tpu.memory_space<vmem>>, vector<8x1xf32>
    %cst_17 = arith.constant dense<0xFF800000> : vector<8xf32>
    %24 = vector.multi_reduction <maximumf>, %20, %cst_17 [1] : vector<8x8xf32> to vector<8xf32>
    %25 = vector.shape_cast %24 : vector<8xf32> to vector<8x1xf32>
    %26 = arith.maximumf %23, %25 : vector<8x1xf32>
    %c0_18 = arith.constant 0 : index
    %c0_19 = arith.constant 0 : index
    %27 = vector.load %arg9[%c0_18, %c0_19] : memref<8x1xf32, #tpu.memory_space<vmem>>, vector<8x1xf32>
    tpu.vector_store %arg9[%c0_18, %c0_19], %26 {strides = array<i32>} : memref<8x1xf32, #tpu.memory_space<vmem>>, vector<8x1xf32>,
    %c0_20 = arith.constant 0 : index
    %c0_21 = arith.constant 0 : index
    %28 = vector.load %arg10[%c0_20, %c0_21] : memref<8x1xf32, #tpu.memory_space<vmem>>, vector<8x1xf32>
    %cst_22 = arith.constant dense<0x7F800000> : vector<8xf32>
    %29 = vector.multi_reduction <minimumf>, %22, %cst_22 [1] : vector<8x8xf32> to vector<8xf32>
    %30 = vector.shape_cast %29 : vector<8xf32> to vector<8x1xf32>
    %31 = arith.minimumf %28, %30 : vector<8x1xf32>
    %c0_23 = arith.constant 0 : index
    %c0_24 = arith.constant 0 : index
    %32 = vector.load %arg10[%c0_23, %c0_24] : memref<8x1xf32, #tpu.memory_space<vmem>>, vector<8x1xf32>
    tpu.vector_store %arg10[%c0_23, %c0_24], %31 {strides = array<i32>} : memref<8x1xf32, #tpu.memory_space<vmem>>, vector<8x1xf32>,
    %c0_i32_25 = arith.constant 0 : i32
    %33 = arith.cmpi eq, %arg1, %c0_i32_25 : i32
    %34 = arith.extui %33 : i1 to i32
    %c0_i32_26 = arith.constant 0 : i32
    %35 = arith.cmpi ne, %34, %c0_i32_26 : i32
    scf.if %35 {
      %c0_27 = arith.constant 0 : index
      %c0_28 = arith.constant 0 : index
      %36 = vector.load %arg9[%c0_27, %c0_28] : memref<8x1xf32, #tpu.memory_space<vmem>>, vector<8x1xf32>
      %cst_29 = arith.constant 9.99999996E-13 : f32
      %37 = vector.broadcast %cst_29 : f32 to vector<8x1xf32>
      %38 = arith.maximumf %36, %37 : vector<8x1xf32>
      %39 = math.sqrt %38 : vector<8x1xf32>
      %c0_30 = arith.constant 0 : index
      %c0_31 = arith.constant 0 : index
      %40 = vector.load %arg10[%c0_30, %c0_31] : memref<8x1xf32, #tpu.memory_space<vmem>>, vector<8x1xf32>
      %cst_32 = arith.constant 9.99999996E-13 : f32
      %41 = vector.broadcast %cst_32 : f32 to vector<8x1xf32>
      %42 = arith.maximumf %40, %41 : vector<8x1xf32>
      %43 = math.sqrt %42 : vector<8x1xf32>
      %44 = arith.subf %39, %43 : vector<8x1xf32>
      %cst_33 = arith.constant 3.000000e-01 : f32
      %45 = vector.broadcast %cst_33 : f32 to vector<8x1xf32>
      %46 = arith.addf %44, %45 : vector<8x1xf32>
      %cst_34 = arith.constant 0.000000e+00 : f32
      %47 = vector.broadcast %cst_34 : f32 to vector<8x1xf32>
      %48 = arith.maximumf %46, %47 : vector<8x1xf32>
      %c0_35 = arith.constant 0 : index
      %c0_36 = arith.constant 0 : index
      %49 = vector.load %arg8[%c0_35, %c0_36] : memref<8x1xf32, #tpu.memory_space<vmem>>, vector<8x1xf32>
      tpu.vector_store %arg8[%c0_35, %c0_36], %48 {strides = array<i32>} : memref<8x1xf32, #tpu.memory_space<vmem>>, vector<8x1xf32>,
    } else {
    }
    return
  }
  func.func @transform_0(%arg0: i32, %arg1: i32) -> (i32, i32) {
    %c0_i32 = arith.constant 0 : i32
    %c0_i32_0 = arith.constant 0 : i32
    return %arg0, %c0_i32 : i32, i32
  }
  func.func @transform_1(%arg0: i32, %arg1: i32) -> (i32, i32) {
    %c0_i32 = arith.constant 0 : i32
    %c0_i32_0 = arith.constant 0 : i32
    return %arg1, %c0_i32 : i32, i32
  }
  func.func @transform_2(%arg0: i32, %arg1: i32) -> (i32, i32) {
    %c0_i32 = arith.constant 0 : i32
    %c0_i32_0 = arith.constant 0 : i32
    return %arg0, %c0_i32 : i32, i32
  }
  func.func @transform_3(%arg0: i32, %arg1: i32) -> (i32, i32) {
    %c0_i32 = arith.constant 0 : i32
    %c0_i32_0 = arith.constant 0 : i32
    return %c0_i32, %arg1 : i32, i32
  }
  func.func @transform_4(%arg0: i32, %arg1: i32) -> (i32, i32) {
    %c0_i32 = arith.constant 0 : i32
    %c0_i32_0 = arith.constant 0 : i32
    return %arg0, %c0_i32 : i32, i32
  }
  func.func @transform_5(%arg0: i32, %arg1: i32) -> (i32, i32) {
    %c0_i32 = arith.constant 0 : i32
    %c0_i32_0 = arith.constant 0 : i32
    return %c0_i32, %arg1 : i32, i32
  }
  func.func @transform_6(%arg0: i32, %arg1: i32) -> (i32, i32) {
    %c0_i32 = arith.constant 0 : i32
    %c0_i32_0 = arith.constant 0 : i32
    return %arg0, %c0_i32 : i32, i32
  }
}

</mosaic_0001>

<bundles_post_ra>
// kernel: tpu_custom_call.1
= control target key start
LH: loop header
LB: loop body
LE: loop exit
PB: predicated region body
PF: predicated region fallthrough
CT: control target
= control target key end

     0   :  { %v192_v0 = vmov 0.0   ;;  %vm193_vm0 = vmmov 0   ;;  %v194_v4 = vmov 0   ;;  %vm27_vm1 = vcmask 7168   ;;  %s258_s1 = inlined_call_operand.vmem [shape: f32[8,128], index: 1, kind: input, shape index: {}]   ;;  %s259_s0 = inlined_call_operand.vmem [shape: f32[8,128], index: 0, kind: input, shape index: {}]   ;;  %s260_s2 = inlined_call_operand.vmem [shape: f32[8,1], index: 2, kind: input, shape index: {}]   ;;  %s261_s4 = inlined_call_operand.vmem [shape: s32[8,1], index: 4, kind: input, shape index: {}]   ;;  %s262_s3 = inlined_call_operand.vmem [shape: f32[1,8], index: 3, kind: input, shape index: {}]   ;;  %s263_s5 = inlined_call_operand.vmem [shape: s32[1,8], index: 5, kind: input, shape index: {}]   ;;  %s264_s6 = inlined_call_operand.vmem [shape: f32[8,1], index: 6, kind: output, shape index: {}]  }
   0x1   :  { %177 = vmatprep.subr.mxu0 %v192_v0  ;;  %v31_v1 = vld [vmem:[%s258_s1] sm:$0xff]  ;;  %179 = vmatprep.mubr.msk.f32.mxu0 %vm193_vm0, %v192_v0  ;;  %v195_v6 = vmov -1e+30   ;;  %vm131_vm2 = vcmask 64512   ;;  %v196_v20 = vmov 1e+30  }
   0x2   :  { %v102_v2 = vld [vmem:[%s260_s2] sm:$0xff]  ;;  %178 = vmatpush3.xpose.msra.mxu0 %v31_v1  ;;  %187 = vset.pattern.permute.xlu0 %v194_v4  ;;  %28 = vst.msk [vmem:[#allocation2] sm:$0xff] %vm27_vm1, %v195_v6  ;;  %29 = vst.msk [vmem:[#allocation3] sm:$0xff] %vm27_vm1, %v196_v20 }
   0x3   :  { %v30_v3 = vld [vmem:[%s259_s0] sm:$0xff]  ;;  %106 = vperm.xlu0 %187, %v102_v2  }
   0x4   :  { %v118_v5 = vld [vmem:[%s261_s4] sm:$0xff] }
   0x5   :  { %180 = vmatmul.mubr.f32.vlgmr.msra.gmra.mrb[0].mxu0 %v30_v3  ;;  %v173_v8 = vld [vmem:[%s262_s3] ss:$0 sm:$0xff] }
   0x6   :  { %v174_v11 = vld [vmem:[%s263_s5] ss:$0 sm:$0xff] }
   0x7   :  { %121 = vperm.xlu0 %187, %v118_v5  }
   0x9   :  { %v130_v21 = vld [vmem:[#allocation2] sm:$0xff]  ;;  %v138_v24 = vld [vmem:[#allocation3] sm:$0xff] }
  0x82   :  { %v107_v7 = vpop.permute.xlu0 %106 }
  0x83   :  { %v115_v9 = vadd.f32 %v173_v8, %v107_v7 }
  0x86   :  { %v122_v12 = vpop.permute.xlu0 %121 }
  0x87   :  { %vm127_vm3 = vcmp.eq.s32.totalorder %v122_v12, %v174_v11 }
  0xd8   :  { %v98_v10 = vpop.f32.mrb[0].mxu0 }
  0xd9   :  { %v116_v13 = vmul.f32 2.0, %v98_v10  ;;  %v181_v14 = vpop.f32.mrb[1].mxu0 }
  0xdb   :  { %v117_v15 = vsub.f32 %v115_v9, %v116_v13 }
  0xdd   :  { %v128_v16 = vsel %vm127_vm3, %v117_v15, -1e+30  ;;  %v129_v18 = vsel %vm127_vm3, 1e+30, %v117_v15 }
  0xde   :  { %v132_v17 = vsel %vm131_vm2, %v128_v16, -inf  ;;  %v139_v19 = vsel %vm131_vm2, %v129_v18, inf }
  0xdf   :  { %133 = vmax.xlane.f32.xlu1 %v132_v17 }
  0xe3   :  { %140 = vmin.xlane.f32.xlu1 %v139_v19 }
 0x16c   :  { %v134_v22 = vpop.xlane.xlu1 %133 }
 0x16d   :  { %v135_v23 = vmax.f32 %v130_v21, %v134_v22 }
 0x16f   :  { %137 = vst.msk [vmem:[#allocation2] sm:$0xff] %vm27_vm1, %v135_v23 }
 0x170   :  { %v141_v25 = vpop.xlane.xlu1 %140 }
 0x171   :  { %v142_v26 = vmin.f32 %v138_v24, %v141_v25 }
 0x173   :  { %143 = vst.msk [vmem:[#allocation3] sm:$0xff] %vm27_vm1, %v142_v26 }
 0x176   :  { %v147_v27 = vld [vmem:[#allocation2] sm:$0xff] }
 0x177   :  { %v148_v28 = vmax.f32 %v147_v27, 1e-12 }
 0x179   :  { %188 = vrsqrt.f32 %v148_v28  ;;  %vm151_vm4 = vcmp.eq.f32.partialorder %v148_v28, inf  ;;  %v154_v36 = vand.u32 2147483648, %v148_v28  ;;  %vm153_vm6 = vcmp.eq.f32.partialorder %v148_v28, 0.0 }
 0x17a   :  { %v156_v29 = vld [vmem:[#allocation3] sm:$0xff] }
 0x17b   :  { %v157_v30 = vmax.f32 %v156_v29, 1e-12 }
 0x17d   :  { %190 = vrsqrt.f32 %v157_v30  ;;  %vm160_vm5 = vcmp.eq.f32.partialorder %v157_v30, inf  ;;  %v163_v37 = vand.u32 2147483648, %v157_v30  ;;  %vm162_vm7 = vcmp.eq.f32.partialorder %v157_v30, 0.0 }
 0x183   :  { %v189_v31 = vpop.eup %188 }
 0x184   :  { %v150_v32 = vmul.f32 %v189_v31, %v148_v28 }
 0x186   :  { %v152_v34 = vsel %vm151_vm4, %v148_v28, %v150_v32 }
 0x187   :  { %v191_v33 = vpop.eup %190  ;;  %v155_v39 = vsel %vm153_vm6, %v154_v36, %v152_v34 }
 0x188   :  { %v159_v35 = vmul.f32 %v191_v33, %v157_v30 }
 0x18a   :  { %v161_v38 = vsel %vm160_vm5, %v157_v30, %v159_v35 }
 0x18b   :  { %v164_v40 = vsel %vm162_vm7, %v163_v37, %v161_v38 }
 0x18c   :  { %v165_v41 = vsub.f32 %v155_v39, %v164_v40 }
 0x18e   :  { %v166_v42 = vadd.f32 0.3, %v165_v41 }
 0x190   :  { %v167_v43 = vmax.f32 %v166_v42, 0.0 }
 0x192   :  { %168 = vst.msk [vmem:[%s264_s6] sm:$0xff] %vm27_vm1, %v167_v43 }

</bundles_post_ra>
